<compile_context>
chip_gen: v7x
topology: tpu7x:2x2x1
jax: 0.10.0
libtpu: 0.0.40
codegen_flags: <defaults>
</compile_context>

<pallas_src>
import functools

import jax
import jax.numpy as jnp
from jax.experimental import pallas as pl
from jax.experimental.pallas import tpu as pltpu


def _masked_mean_kernel(x_ref, m_ref, o_ref, num_acc, den_acc, *, ts, seq_len):
    s = pl.program_id(1)

    @pl.when(s == 0)
    def _():
        num_acc[...] = jnp.zeros_like(num_acc)
        den_acc[...] = jnp.zeros_like(den_acc)

    x = x_ref[...].astype(jnp.float32)          # (TB, TS, H)
    m = m_ref[...].astype(jnp.float32)          # (TB, TS, 1) -> lane-broadcast over H

    if seq_len % ts != 0:
        # Last sequence block is partial: zero both operands on the padded rows
        # (OOB reads are undefined and could contain inf/NaN).
        row = s * ts + jax.lax.broadcasted_iota(jnp.int32, (1, ts, 1), 1)
        valid = row < seq_len
        x = jnp.where(valid, x, 0.0)
        m = jnp.where(valid, m, 0.0)

    num_acc[...] += jnp.sum(x * m, axis=1)      # masked sum over seq -> (TB, H)
    den_acc[...] += jnp.sum(m, axis=1)          # valid-token count   -> (TB, 1)

    @pl.when(s == pl.num_programs(1) - 1)
    def _():
        den = jnp.maximum(den_acc[...], 1.0)            # guard all-padding rows
        inv = pl.reciprocal(den, approx=False)          # exact, on a tiny (TB,1) tile
        o_ref[...] = (num_acc[...] * inv).astype(o_ref.dtype)


def _plain_mean_kernel(x_ref, o_ref, num_acc, *, ts, seq_len):
    s = pl.program_id(1)

    @pl.when(s == 0)
    def _():
        num_acc[...] = jnp.zeros_like(num_acc)

    x = x_ref[...].astype(jnp.float32)          # (TB, TS, H)

    if seq_len % ts != 0:
        row = s * ts + jax.lax.broadcasted_iota(jnp.int32, (1, ts, 1), 1)
        x = jnp.where(row < seq_len, x, 0.0)

    num_acc[...] += jnp.sum(x, axis=1)          # (TB, H)

    @pl.when(s == pl.num_programs(1) - 1)
    def _():
        o_ref[...] = (num_acc[...] * (1.0 / seq_len)).astype(o_ref.dtype)


def _choose_tiles(B, S, H, itemsize, target_block_bytes):
    """Pick (batch_tile, seq_tile) so one features block is ~target_block_bytes."""
    tb = B if B <= 8 else 8                 # keeps the (8,128) rule on the (TB,H) output
    row_bytes = max(1, H * itemsize)

    if S <= 8 or tb * S * row_bytes <= target_block_bytes:
        ts = S                              # whole sequence fits in one block
    else:
        ts = (target_block_bytes // (tb * row_bytes)) // 8 * 8
        ts = int(max(8, min(ts, (S // 8) * 8)))

    # Whole sequence fits: spend the remaining budget on the batch tile
    # (still a multiple of 8, never exceeding B).
    if ts == S and B > 8:
        while tb + 8 <= B and (tb + 8) * S * row_bytes <= target_block_bytes:
            tb += 8
    return int(tb), int(ts)


def mean_pooling(features, input_mask=None, *, block_bytes=2 << 20):
    """features: [B, S, H]; input_mask: [B, S] or None -> [B, H]."""
    B, S, H = features.shape
    itemsize = jnp.dtype(features.dtype).itemsize

    tb, ts = _choose_tiles(B, S, H, itemsize, block_bytes)
    grid = (pl.cdiv(B, tb), pl.cdiv(S, ts))

    # VMEM accounting: 2x double-buffered inputs/outputs + f32 upcast temporary
    # + accumulator scratch.  Leave headroom well below v7x's 64 MiB per TC.
    mask_itemsize = 0 if input_mask is None else jnp.dtype(input_mask.dtype).itemsize
    feat_block = tb * ts * H * itemsize
    mask_block = tb * ts * mask_itemsize
    out_block = tb * H * itemsize
    scratch_bytes = tb * H * 4 + tb * 4
    upcast_tmp = tb * ts * H * 4
    est_vmem = 2 * (feat_block + mask_block + out_block) + scratch_bytes + upcast_tmp
    vmem_limit = int(min(48 << 20, max(est_vmem + (4 << 20), 16 << 20)))

    compiler_params = pltpu.CompilerParams(
        dimension_semantics=("parallel", "arbitrary"),
        vmem_limit_bytes=vmem_limit,
    )

    if input_mask is None:
        cost = pl.CostEstimate(
            flops=B * S * H + B * H,
            transcendentals=0,
            bytes_accessed=(B * S * H + B * H) * itemsize,
        )
        kernel = functools.partial(_plain_mean_kernel, ts=ts, seq_len=S)
        return pl.pallas_call(
            kernel,
            out_shape=jax.ShapeDtypeStruct((B, H), features.dtype),
            grid=grid,
            in_specs=[pl.BlockSpec((tb, ts, H), lambda b, s: (b, s, 0))],
            out_specs=pl.BlockSpec((tb, H), lambda b, s: (b, 0)),
            scratch_shapes=[pltpu.VMEM((tb, H), jnp.float32)],
            compiler_params=compiler_params,
            cost_estimate=cost,
        )(features)

    # (B, S, 1): keep S on the sublane axis so the H-broadcast is a lane-broadcast.
    mask3 = input_mask.reshape(B, S, 1)
    cost = pl.CostEstimate(
        flops=2 * B * S * H + B * S + B * H,
        transcendentals=0,
        bytes_accessed=B * S * H * itemsize + B * S * mask_itemsize + B * H * itemsize,
    )
    kernel = functools.partial(_masked_mean_kernel, ts=ts, seq_len=S)
    return pl.pallas_call(
        kernel,
        out_shape=jax.ShapeDtypeStruct((B, H), features.dtype),
        grid=grid,
        in_specs=[
            pl.BlockSpec((tb, ts, H), lambda b, s: (b, s, 0)),
            pl.BlockSpec((tb, ts, 1), lambda b, s: (b, s, 0)),
        ],
        out_specs=pl.BlockSpec((tb, H), lambda b, s: (b, 0)),
        scratch_shapes=[
            pltpu.VMEM((tb, H), jnp.float32),   # masked-sum accumulator
            pltpu.VMEM((tb, 1), jnp.float32),   # valid-token-count accumulator
        ],
        compiler_params=compiler_params,
        cost_estimate=cost,
    )(features, mask3)


if __name__ == "__main__":
    key = jax.random.PRNGKey(0)
    kf, km, kf2, km2 = jax.random.split(key, 4)

    # Small shapes consistent with the module: batch=2, seq=8, hidden=32.
    B, S, H = 2, 8, 32
    features = jax.random.normal(kf, (B, S, H), dtype=jnp.float32)
    mask = (jax.random.uniform(km, (B, S)) > 0.3).astype(jnp.float32)
    mask = mask.at[:, 0].set(1.0)   # at least one valid token per row

    out_masked = jax.block_until_ready(mean_pooling(features, mask))
    out_plain = jax.block_until_ready(mean_pooling(features, None))

    # Pure-JAX references (exact semantics of the PyTorch forward).
    ref_masked = jnp.sum(features * mask[:, :, None], axis=1) / jnp.sum(
        mask, axis=1, keepdims=True
    )
    ref_plain = jnp.mean(features, axis=1)

    assert out_masked.shape == (B, H) and out_plain.shape == (B, H)
    assert jnp.allclose(out_masked, ref_masked, atol=1e-5, rtol=1e-5), "masked mismatch"
    assert jnp.allclose(out_plain, ref_plain, atol=1e-5, rtol=1e-5), "no-mask mismatch"

    # Exercise the multi-step grid (batch + sequence tiling, partial blocks on
    # both axes, accumulator init/finalize) by shrinking the per-block budget.
    B2, S2, H2 = 12, 60, 128
    f2 = jax.random.normal(kf2, (B2, S2, H2), dtype=jnp.float32)
    m2 = (jax.random.uniform(km2, (B2, S2)) > 0.3).astype(jnp.float32)
    m2 = m2.at[:, 0].set(1.0)

    out2 = jax.block_until_ready(mean_pooling(f2, m2, block_bytes=32 * 1024))
    ref2 = jnp.sum(f2 * m2[:, :, None], axis=1) / jnp.sum(m2, axis=1, keepdims=True)
    assert jnp.allclose(out2, ref2, atol=1e-5, rtol=1e-5), "tiled masked mismatch"

    out2p = jax.block_until_ready(mean_pooling(f2, None, block_bytes=32 * 1024))
    ref2p = jnp.mean(f2, axis=1)
    assert jnp.allclose(out2p, ref2p, atol=1e-5, rtol=1e-5), "tiled no-mask mismatch"

    print("KERNEL_OK")
</pallas_src>

<mosaic_0001>
module attributes {stable_mosaic.version = 11 : i64} {
  func.func @_masked_mean_kernel(%arg0: i32, %arg1: i32, %arg2: memref<2x8x32xf32, #tpu.memory_space<vmem>>, %arg3: memref<2x8x1xf32, #tpu.memory_space<vmem>>, %arg4: memref<2x32xf32, #tpu.memory_space<vmem>>, %arg5: memref<2x32xf32, #tpu.memory_space<vmem>>, %arg6: memref<2x1xf32, #tpu.memory_space<vmem>>) attributes {dimension_semantics = [#tpu.dimension_semantics<parallel>, #tpu.dimension_semantics<arbitrary>], iteration_bounds = array<i64: 1, 1>, scalar_prefetch = 0 : i64, scratch_operands = 2 : i64, tpu.core_type = #tpu.core_type<tc>, window_params = [{transform_indices = @transform_0, window_bounds = array<i64: 2, 8, 32>}, {transform_indices = @transform_1, window_bounds = array<i64: 2, 8, 1>}, {transform_indices = @transform_2, window_bounds = array<i64: 2, 32>}]} {
    %c0_i32 = arith.constant 0 : i32
    %0 = arith.cmpi eq, %arg1, %c0_i32 : i32
    %1 = arith.extui %0 : i1 to i32
    %c0_i32_0 = arith.constant 0 : i32
    %2 = arith.cmpi ne, %1, %c0_i32_0 : i32
    scf.if %2 {
      %cst_17 = arith.constant 0.000000e+00 : f32
      %18 = vector.broadcast %cst_17 : f32 to vector<2x32xf32>
      %c0_18 = arith.constant 0 : index
      %c0_19 = arith.constant 0 : index
      %19 = vector.load %arg5[%c0_18, %c0_19] : memref<2x32xf32, #tpu.memory_space<vmem>>, vector<2x32xf32>
      tpu.vector_store %arg5[%c0_18, %c0_19], %18 {strides = array<i32>} : memref<2x32xf32, #tpu.memory_space<vmem>>, vector<2x32xf32>,
      %cst_20 = arith.constant 0.000000e+00 : f32
      %20 = vector.broadcast %cst_20 : f32 to vector<2x1xf32>
      %c0_21 = arith.constant 0 : index
      %c0_22 = arith.constant 0 : index
      %21 = vector.load %arg6[%c0_21, %c0_22] : memref<2x1xf32, #tpu.memory_space<vmem>>, vector<2x1xf32>
      tpu.vector_store %arg6[%c0_21, %c0_22], %20 {strides = array<i32>} : memref<2x1xf32, #tpu.memory_space<vmem>>, vector<2x1xf32>,
    } else {
    }
    %c0 = arith.constant 0 : index
    %c0_1 = arith.constant 0 : index
    %c0_2 = arith.constant 0 : index
    %3 = vector.load %arg2[%c0, %c0_1, %c0_2] : memref<2x8x32xf32, #tpu.memory_space<vmem>>, vector<2x8x32xf32>
    %c0_3 = arith.constant 0 : index
    %c0_4 = arith.constant 0 : index
    %c0_5 = arith.constant 0 : index
    %4 = vector.load %arg3[%c0_3, %c0_4, %c0_5] : memref<2x8x1xf32, #tpu.memory_space<vmem>>, vector<2x8x1xf32>
    %c0_6 = arith.constant 0 : index
    %c0_7 = arith.constant 0 : index
    %5 = vector.load %arg5[%c0_6, %c0_7] : memref<2x32xf32, #tpu.memory_space<vmem>>, vector<2x32xf32>
    %6 = vector.broadcast %4 : vector<2x8x1xf32> to vector<2x8x32xf32>
    %7 = arith.mulf %3, %6 : vector<2x8x32xf32>
    %cst = arith.constant dense<0.000000e+00> : vector<2x32xf32>
    %8 = vector.multi_reduction <add>, %7, %cst [1] : vector<2x8x32xf32> to vector<2x32xf32>
    %9 = arith.addf %5, %8 : vector<2x32xf32>
    %c0_8 = arith.constant 0 : index
    %c0_9 = arith.constant 0 : index
    %10 = vector.load %arg5[%c0_8, %c0_9] : memref<2x32xf32, #tpu.memory_space<vmem>>, vector<2x32xf32>
    tpu.vector_store %arg5[%c0_8, %c0_9], %9 {strides = array<i32>} : memref<2x32xf32, #tpu.memory_space<vmem>>, vector<2x32xf32>,
    %c0_10 = arith.constant 0 : index
    %c0_11 = arith.constant 0 : index
    %11 = vector.load %arg6[%c0_10, %c0_11] : memref<2x1xf32, #tpu.memory_space<vmem>>, vector<2x1xf32>
    %cst_12 = arith.constant dense<0.000000e+00> : vector<2x1xf32>
    %12 = vector.multi_reduction <add>, %4, %cst_12 [1] : vector<2x8x1xf32> to vector<2x1xf32>
    %13 = arith.addf %11, %12 : vector<2x1xf32>
    %c0_13 = arith.constant 0 : index
    %c0_14 = arith.constant 0 : index
    %14 = vector.load %arg6[%c0_13, %c0_14] : memref<2x1xf32, #tpu.memory_space<vmem>>, vector<2x1xf32>
    tpu.vector_store %arg6[%c0_13, %c0_14], %13 {strides = array<i32>} : memref<2x1xf32, #tpu.memory_space<vmem>>, vector<2x1xf32>,
    %c0_i32_15 = arith.constant 0 : i32
    %15 = arith.cmpi eq, %arg1, %c0_i32_15 : i32
    %16 = arith.extui %15 : i1 to i32
    %c0_i32_16 = arith.constant 0 : i32
    %17 = arith.cmpi ne, %16, %c0_i32_16 : i32
    scf.if %17 {
      %c0_17 = arith.constant 0 : index
      %c0_18 = arith.constant 0 : index
      %18 = vector.load %arg6[%c0_17, %c0_18] : memref<2x1xf32, #tpu.memory_space<vmem>>, vector<2x1xf32>
      %cst_19 = arith.constant 1.000000e+00 : f32
      %19 = vector.broadcast %cst_19 : f32 to vector<2x1xf32>
      %20 = arith.maximumf %18, %19 : vector<2x1xf32>
      %21 = tpu.reciprocal %20 : vector<2x1xf32> -> vector<2x1xf32>
      %c0_20 = arith.constant 0 : index
      %c0_21 = arith.constant 0 : index
      %22 = vector.load %arg5[%c0_20, %c0_21] : memref<2x32xf32, #tpu.memory_space<vmem>>, vector<2x32xf32>
      %23 = vector.broadcast %21 : vector<2x1xf32> to vector<2x32xf32>
      %24 = arith.mulf %22, %23 : vector<2x32xf32>
      %c0_22 = arith.constant 0 : index
      %c0_23 = arith.constant 0 : index
      %25 = vector.load %arg4[%c0_22, %c0_23] : memref<2x32xf32, #tpu.memory_space<vmem>>, vector<2x32xf32>
      tpu.vector_store %arg4[%c0_22, %c0_23], %24 {strides = array<i32>} : memref<2x32xf32, #tpu.memory_space<vmem>>, vector<2x32xf32>,
    } else {
    }
    return
  }
  func.func @transform_0(%arg0: i32, %arg1: i32) -> (i32, i32, i32) {
    %c0_i32 = arith.constant 0 : i32
    %c0_i32_0 = arith.constant 0 : i32
    return %arg0, %arg1, %c0_i32 : i32, i32, i32
  }
  func.func @transform_1(%arg0: i32, %arg1: i32) -> (i32, i32, i32) {
    %c0_i32 = arith.constant 0 : i32
    %c0_i32_0 = arith.constant 0 : i32
    return %arg0, %arg1, %c0_i32 : i32, i32, i32
  }
  func.func @transform_2(%arg0: i32, %arg1: i32) -> (i32, i32) {
    %c0_i32 = arith.constant 0 : i32
    %c0_i32_0 = arith.constant 0 : i32
    return %arg0, %c0_i32 : i32, i32
  }
}

</mosaic_0001>

<bundles_post_ra>
// kernel: tpu_custom_call.1
= control target key start
LH: loop header
LB: loop body
LE: loop exit
PB: predicated region body
PF: predicated region fallthrough
CT: control target
= control target key end

     0   :  { %vm61_vm0 = vcmask 7168   ;;  %v142_v2 = vmov 0   ;;  %vm18_vm1 = vcmask 1024   ;;  %v143_v7 = vmov 0.0   ;;  %s191_s0 = inlined_call_operand.vmem [shape: f32[2,8,32], index: 0, kind: input, shape index: {}]   ;;  %s192_s1 = inlined_call_operand.vmem [shape: f32[2,8,1], index: 1, kind: input, shape index: {}]   ;;  %s193_s2 = inlined_call_operand.hbm [shape: f32[2,32], index: 2, kind: output, shape index: {}]  }
   0x1   :  { %v22_v0 = vld [vmem:[%s192_s1] sm:$0xff]  ;;  %v23_v1 = vld [vmem:[%s192_s1 + $0x8] sm:$0xff]  ;;  %114 = vset.pattern.permute.xlu0 %v142_v2  ;;  %115 = vset.pattern.permute.xlu1 %v142_v2  ;;  %19 = vst.msk [vmem:[#allocation3] sm:$0x3] %vm18_vm1, %v143_v7 }
   0x2   :  { %v62_v3 = vsel %vm61_vm0, %v22_v0, 0.0  ;;  %v69_v4 = vsel %vm61_vm0, %v23_v1, 0.0  ;;  %27 = vperm.xlu0 %114, %v22_v0  }
   0x3   :  { %v63_v5 = vrot.slane %v62_v3, 4  ;;  %v70_v6 = vrot.slane %v69_v4, 4 }
   0x4   :  { %7 = vsyncpa [#allocation5], 0  ;;  %vm54_vm2 = vcmask 1041409   ;;  %vm16_vm3 = vcmask 254976   ;;  %v20_v24 = vld [vmem:[%s191_s0] sm:$0xff]  ;;  %vm37_vm4 = vcmask 261120  }
   0x5   :  { %v64_v8 = vadd.f32 %v63_v5, %v62_v3  ;;  %v71_v9 = vadd.f32 %v70_v6, %v69_v4  ;;  %17 = vst.msk [vmem:[#allocation2] sm:$0x3] %vm16_vm3, %v143_v7  ;;  %v21_v27 = vld [vmem:[%s191_s0 + $0x8] sm:$0xff]  ;;  %s144_s0 = smov [#allocation4]  }
   0x6   :  { %32 = vperm.xlu0 %114, %v23_v1   ;;  %s103_s16 = sshll.u32 %s144_s0, 4  ;;  %s104_s16 = int_to_ptr.vmem [resolvable:$true] %s103_s16 }
   0x7   :  { %v65_v10 = vrot.slane %v64_v8, 2  ;;  %v72_v11 = vrot.slane %v71_v9, 2  ;;  %s118_s17 = scalar_lea.vmem %s104_s16, 32  ;;  %p123_p1 = scmp.lt.s32.totalorder %s104_s16, %s104_s16 }
   0x8   :  { %v60_v18 = vld [vmem:[#allocation3] sm:$0x3]  ;;  %p119_p0 = scmp.ne.s32.totalorder %s104_s16, %s118_s17  ;;  %p124_p2 = scmp.lt.s32.totalorder %s118_s17, %s118_s17 }
   0x9   :  { %v66_v12 = vadd.f32 %v65_v10, %v64_v8  ;;  %v73_v13 = vadd.f32 %v72_v11, %v71_v9 }
   0xa   :  { %p125_p3 = por %p124_p2, %p123_p1 }
   0xb   :  { %v67_v14 = vrot.slane %v66_v12, 1  ;;  %v74_v15 = vrot.slane %v73_v13, 1 }
   0xc   :  { %v24_v44 = vld [vmem:[#allocation2] sm:$0x3]  ;;  %p126_p4 = pnand %p125_p3, %p119_p0 }
   0xd   :  { %v68_v16 = vadd.f32 %v67_v14, %v66_v12  ;;  %v75_v17 = vadd.f32 %v74_v15, %v73_v13 }
   0xf   :  { %v78_v19 = vsel %vm54_vm2, %v75_v17, %v68_v16 }
  0x10   :  { %v80_v20 = vadd.f32 %v78_v19, %v60_v18 }
  0x12   :  { %82 = vst.msk [vmem:[#allocation3] sm:$0x3] %vm18_vm1, %v80_v20 }
  0x19   :  { %v86_v21 = vld [vmem:[#allocation3] sm:$0x3] }
  0x1a   :  { %v87_v22 = vmax.f32 %v86_v21, 1.0 }
  0x1c   :  { %116 = vrcp.f32 %v87_v22 }
  0x26   :  { %v117_v23 = vpop.eup %116 }
  0x27   :  { %92 = vperm.xlu1 %115, %v117_v23  }
  0x81   :  { %v28_v25 = vpop.permute.xlu0 %27 }
  0x82   :  { %v35_v26 = vmul.f32 %v28_v25, %v20_v24 }
  0x84   :  { %v38_v28 = vsel %vm37_vm4, %v35_v26, 0.0 }
  0x85   :  { %v39_v29 = vrot.slane %v38_v28, 4  ;;  %v33_v30 = vpop.permute.xlu0 %32 }
  0x86   :  { %v36_v31 = vmul.f32 %v33_v30, %v21_v27 }
  0x87   :  { %v40_v32 = vadd.f32 %v39_v29, %v38_v28 }
  0x88   :  { %v45_v33 = vsel %vm37_vm4, %v36_v31, 0.0 }
  0x89   :  { %v41_v34 = vrot.slane %v40_v32, 2  ;;  %v46_v35 = vrot.slane %v45_v33, 4 }
  0x8b   :  { %v42_v36 = vadd.f32 %v41_v34, %v40_v32  ;;  %v47_v37 = vadd.f32 %v46_v35, %v45_v33 }
  0x8d   :  { %v48_v38 = vrot.slane %v47_v37, 2  ;;  %v43_v39 = vrot.slane %v42_v36, 1 }
  0x8f   :  { %v49_v40 = vadd.f32 %v48_v38, %v47_v37  ;;  %v44_v42 = vadd.f32 %v43_v39, %v42_v36 }
  0x91   :  { %v50_v41 = vrot.slane %v49_v40, 1 }
  0x93   :  { %v51_v43 = vadd.f32 %v50_v41, %v49_v40 }
  0x95   :  { %v55_v45 = vsel %vm54_vm2, %v51_v43, %v44_v42 }
  0x96   :  { %v57_v46 = vadd.f32 %v55_v45, %v24_v44 }
  0x98   :  { %59 = vst.msk [vmem:[#allocation2] sm:$0x3] %vm16_vm3, %v57_v46 }
  0x9f   :  { %v89_v48 = vld [vmem:[#allocation2] sm:$0x3] }
  0xa6   :  { %v93_v47 = vpop.permute.xlu1 %92 }
  0xa7   :  { %v95_v49 = vmul.f32 %v93_v47, %v89_v48 }
  0xa9   :  { %96 = vst.msk [vmem:[#allocation4] sm:$0x3] %vm16_vm3, %v95_v49 }
  0xaa   :  { %129 = shalt.err (!%p126_p4)
}
  0xab   :  { %s130_s20 = scalar_lea.hbm %s193_s2, 32 }
  0xac   :  { %p131_p5 = scmp.ne.s32.totalorder %s193_s2, %s130_s20  ;;  %p134_p6 = scmp.lt.u32.totalorder %s130_s20, %s193_s2 }
  0xae   :  { %p136_p7 = pnand %p134_p6, %p131_p5 }
  0xb0   :  { %139 = shalt.err (!%p136_p7)
}
  0xb1   :  { %106 = dma.vmem_to_hbm [thread:$0]  %s104_s16, 32, %s193_s2, [#allocation5]  }
  0xb2   :  { %140 = dma.done.wait [#allocation5], 32  }
  0xb3   :  { %141 = vsyncadd [#allocation5], 4294967264 }
  0xb4   :  { %110 = vsyncpa [#allocation5], 1 }

</bundles_post_ra>
